<compile_context>
chip_gen: v7x
topology: tpu7x:2x2x1
jax: 0.10.0
libtpu: 0.0.40
codegen_flags: <defaults>
</compile_context>

<pallas_src>
import functools

import jax
import jax.numpy as jnp
from jax.experimental import pallas as pl
from jax.experimental.pallas import tpu as pltpu

LATENT = 20
HIDDEN = 200
OUT = 560
IN = 560  # encoder input dim (unused by forward, kept for parity with module)

LANE = 128
SUBLANE = 8
HIDDEN_PAD = 256  # 200 rounded up to a lane multiple (keeps h3 lane-dense)


def _round_up(x, m):
    return (x + m - 1) // m * m


def _decode_kernel(z_ref, w3_ref, b3_ref, w4_ref, b4_ref, o_ref):
    # h3 = relu(z @ W3 + b3); bf16 MXU operands, f32 accumulation.
    z = z_ref[...].astype(jnp.bfloat16)
    h3 = jnp.dot(z, w3_ref[...], preferred_element_type=jnp.float32)
    h3 = jnp.maximum(h3 + b3_ref[...], 0.0)
    # out = sigmoid(h3 @ W4 + b4); second matmul K=256 matches the MXU nicely.
    logits = jnp.dot(h3.astype(jnp.bfloat16), w4_ref[...],
                     preferred_element_type=jnp.float32)
    o_ref[...] = jax.nn.sigmoid(logits + b4_ref[...])


def _cost_estimate(batch):
    return pl.CostEstimate(
        flops=2 * batch * (LATENT * HIDDEN_PAD + HIDDEN_PAD * OUT),
        transcendentals=batch * OUT,  # sigmoid exp
        bytes_accessed=(4 * batch * LATENT                                  # z f32
                        + 2 * (LATENT * HIDDEN_PAD + HIDDEN_PAD * OUT)      # bf16 W
                        + 4 * (HIDDEN_PAD + OUT)                            # f32 biases
                        + 4 * batch * OUT),                                 # f32 out
    )


@functools.partial(jax.jit, static_argnames=("batch_tile",))
def vae_decode(z, w3p, b3p, w4p, b4p, *, batch_tile=2048):
    """Pallas implementation of VAE.decode (== VAE.forward).

    Expects parameters from pad_params(): w3p (LATENT, HIDDEN_PAD) bf16,
    b3p (1, HIDDEN_PAD) f32, w4p (HIDDEN_PAD, OUT) bf16, b4p (1, OUT) f32.
    Returns (B, OUT) f32 with no post-kernel slicing.
    """
    B = z.shape[0]

    if B <= batch_tile:
        # Single invocation, no grid, no pipeline overhead: everything sits
        # in VMEM (~0.3 MB bf16 weights + small activations).  Block shapes
        # equal the full array dims, so no (8,128) alignment is required and
        # no batch padding / output slicing is needed.
        return pl.pallas_call(
            _decode_kernel,
            out_shape=jax.ShapeDtypeStruct((B, OUT), jnp.float32),
            in_specs=[pl.BlockSpec(memory_space=pltpu.MemorySpace.VMEM)] * 5,
            out_specs=pl.BlockSpec(memory_space=pltpu.MemorySpace.VMEM),
            cost_estimate=_cost_estimate(B),
        )(z, w3p, b3p, w4p, b4p)

    # Batch-tiled path: grid over batch (ceil-divided, partial last tile is
    # masked by Pallas — no batch padding), weights resident via constant
    # index maps, batch axis "parallel" so v7x shards tiles across its 2 TCs.
    # Cap TB so the grid has >= 2 steps (both TensorCores busy) while staying
    # a sublane multiple; VMEM stays far under the 32 MiB default scope.
    TB = min(batch_tile, _round_up(pl.cdiv(B, 2), SUBLANE))
    grid = (pl.cdiv(B, TB),)
    return pl.pallas_call(
        _decode_kernel,
        out_shape=jax.ShapeDtypeStruct((B, OUT), jnp.float32),
        grid=grid,
        in_specs=[
            # z tile is contiguous in HBM (full rows); its ~TB*80 B DMA is
            # negligible next to the TB*2240 B output writeback.
            pl.BlockSpec((TB, LATENT), lambda i: (i, 0)),
            pl.BlockSpec((LATENT, HIDDEN_PAD), lambda i: (0, 0)),
            pl.BlockSpec((1, HIDDEN_PAD), lambda i: (0, 0)),
            pl.BlockSpec((HIDDEN_PAD, OUT), lambda i: (0, 0)),
            pl.BlockSpec((1, OUT), lambda i: (0, 0)),
        ],
        out_specs=pl.BlockSpec((TB, OUT), lambda i: (i, 0)),
        compiler_params=pltpu.CompilerParams(
            dimension_semantics=("parallel",),
        ),
        cost_estimate=_cost_estimate(B),
    )(z, w3p, b3p, w4p, b4p)


def init_params(key):
    """Deterministic synthetic parameters matching the module's layer shapes.

    Weights are stored as (in, out) — i.e. transposed relative to
    torch.nn.Linear's (out, in) storage.  Only fc3/fc4 are exercised by
    forward(); fc1/fc21/fc22 are dead code for the forward pass.
    """
    ks = jax.random.split(key, 4)

    def linear(kw, kb, fan_in, fan_out):
        bound = 1.0 / jnp.sqrt(fan_in)
        w = jax.random.uniform(kw, (fan_in, fan_out), jnp.float32, -bound, bound)
        b = jax.random.uniform(kb, (1, fan_out), jnp.float32, -bound, bound)
        return w, b

    w3, b3 = linear(ks[0], ks[1], LATENT, HIDDEN)
    w4, b4 = linear(ks[2], ks[3], HIDDEN, OUT)
    return w3, b3, w4, b4


def pad_params(params):
    """One-time prep: pad the hidden (K-side) dim to 256, cast weights bf16.

    h3's padded columns are exactly zero (zero W3 columns, zero b3 pad), and
    W4's padded rows are zero, so numerics match the unpadded computation up
    to bf16 rounding of the matmul operands (f32 accumulation is kept).
    The OUTPUT dim is NOT padded — the kernel writes the true 560 columns.
    """
    w3, b3, w4, b4 = params
    w3p = jnp.zeros((LATENT, HIDDEN_PAD), jnp.float32).at[:, :HIDDEN].set(w3)
    b3p = jnp.zeros((1, HIDDEN_PAD), jnp.float32).at[:, :HIDDEN].set(b3)
    w4p = jnp.zeros((HIDDEN_PAD, OUT), jnp.float32).at[:HIDDEN, :].set(w4)
    return (w3p.astype(jnp.bfloat16), b3p,
            w4p.astype(jnp.bfloat16), b4)


def vae_forward(x, z, padded_params, *, batch_tile=2048):
    # Faithful to the PyTorch module: x is ignored, decode(z) is returned.
    del x
    w3p, b3p, w4p, b4p = padded_params
    return vae_decode(z, w3p, b3p, w4p, b4p, batch_tile=batch_tile)


def _reference_f32(z, params):
    w3, b3, w4, b4 = params
    return jax.nn.sigmoid(jnp.maximum(z @ w3 + b3, 0.0) @ w4 + b4)


def _reference_bf16(z, params):
    """bf16-operand / f32-accumulation reference matching the kernel math."""
    w3, b3, w4, b4 = params
    h3 = jnp.dot(z.astype(jnp.bfloat16), w3.astype(jnp.bfloat16),
                 preferred_element_type=jnp.float32)
    h3 = jnp.maximum(h3 + b3, 0.0)
    lo = jnp.dot(h3.astype(jnp.bfloat16), w4.astype(jnp.bfloat16),
                 preferred_element_type=jnp.float32)
    return jax.nn.sigmoid(lo + b4)


if __name__ == "__main__":
    key = jax.random.PRNGKey(0)
    k_params, k_x, k_z, k_zbig = jax.random.split(key, 4)

    params = init_params(k_params)
    padded = pad_params(params)

    # Small-batch path (no grid, everything resident in VMEM, exact shapes).
    batch = 4
    x = jax.random.normal(k_x, (batch, IN), jnp.float32)       # unused by forward
    z = jax.random.normal(k_z, (batch, LATENT), jnp.float32)   # module-global latent

    out = jax.block_until_ready(vae_forward(x, z, padded))
    assert out.shape == (batch, OUT)
    assert jnp.allclose(out, _reference_f32(z, params), atol=1e-2)
    assert jnp.allclose(out, _reference_bf16(z, params), atol=1e-3)

    # Batch-tiled path: grid of cdiv(1000, 256) = 4 steps, partial last tile
    # (rows 768..999 valid) handled by Pallas' masked boundary block — no
    # batch padding and no post-kernel slicing.
    big_batch = 1000
    z_big = jax.random.normal(k_zbig, (big_batch, LATENT), jnp.float32)
    out_big = jax.block_until_ready(vae_forward(None, z_big, padded, batch_tile=256))
    assert out_big.shape == (big_batch, OUT)
    assert jnp.allclose(out_big, _reference_f32(z_big, params), atol=1e-2)
    assert jnp.allclose(out_big, _reference_bf16(z_big, params), atol=1e-3)

    print("KERNEL_OK")
</pallas_src>

<mosaic_0001>
module attributes {stable_mosaic.version = 11 : i64} {
  func.func @_decode_kernel(%arg0: memref<4x20xf32, #tpu.memory_space<vmem>>, %arg1: memref<20x256xbf16, #tpu.memory_space<vmem>>, %arg2: memref<1x256xf32, #tpu.memory_space<vmem>>, %arg3: memref<256x560xbf16, #tpu.memory_space<vmem>>, %arg4: memref<1x560xf32, #tpu.memory_space<vmem>>, %arg5: memref<4x560xf32, #tpu.memory_space<vmem>>) attributes {dimension_semantics = [], scalar_prefetch = 0 : i64, scratch_operands = 0 : i64, tpu.core_type = #tpu.core_type<tc>} {
    %c0 = arith.constant 0 : index
    %c0_0 = arith.constant 0 : index
    %0 = vector.load %arg0[%c0, %c0_0] : memref<4x20xf32, #tpu.memory_space<vmem>>, vector<4x20xf32>
    %1 = arith.truncf %0 : vector<4x20xf32> to vector<4x20xbf16>
    %c0_1 = arith.constant 0 : index
    %c0_2 = arith.constant 0 : index
    %2 = vector.load %arg1[%c0_1, %c0_2] : memref<20x256xbf16, #tpu.memory_space<vmem>>, vector<20x256xbf16>
    %cst = arith.constant dense<0.000000e+00> : vector<4x256xf32>
    %3 = tpu.matmul %1, %2, %cst {dimension_numbers = #tpu.dot_dimension_numbers<[1], [0], [0], [1], [0, 0, 1, 1], [], []>} : vector<4x20xbf16>, vector<20x256xbf16>, vector<4x256xf32> -> vector<4x256xf32>
    %c0_3 = arith.constant 0 : index
    %c0_4 = arith.constant 0 : index
    %4 = vector.load %arg2[%c0_3, %c0_4] : memref<1x256xf32, #tpu.memory_space<vmem>>, vector<1x256xf32>
    %5 = vector.broadcast %4 : vector<1x256xf32> to vector<4x256xf32>
    %6 = arith.addf %3, %5 : vector<4x256xf32>
    %cst_5 = arith.constant 0.000000e+00 : f32
    %7 = vector.broadcast %cst_5 : f32 to vector<4x256xf32>
    %8 = arith.maximumf %6, %7 : vector<4x256xf32>
    %9 = arith.truncf %8 : vector<4x256xf32> to vector<4x256xbf16>
    %c0_6 = arith.constant 0 : index
    %c0_7 = arith.constant 0 : index
    %10 = vector.load %arg3[%c0_6, %c0_7] : memref<256x560xbf16, #tpu.memory_space<vmem>>, vector<256x560xbf16>
    %cst_8 = arith.constant dense<0.000000e+00> : vector<4x560xf32>
    %11 = tpu.matmul %9, %10, %cst_8 {dimension_numbers = #tpu.dot_dimension_numbers<[1], [0], [0], [1], [0, 0, 1, 1], [], []>} : vector<4x256xbf16>, vector<256x560xbf16>, vector<4x560xf32> -> vector<4x560xf32>
    %c0_9 = arith.constant 0 : index
    %c0_10 = arith.constant 0 : index
    %12 = vector.load %arg4[%c0_9, %c0_10] : memref<1x560xf32, #tpu.memory_space<vmem>>, vector<1x560xf32>
    %13 = vector.broadcast %12 : vector<1x560xf32> to vector<4x560xf32>
    %14 = arith.addf %11, %13 : vector<4x560xf32>
    %15 = arith.negf %14 : vector<4x560xf32>
    %16 = math.exp %15 : vector<4x560xf32>
    %cst_11 = arith.constant 1.000000e+00 : f32
    %17 = vector.broadcast %cst_11 : f32 to vector<4x560xf32>
    %18 = arith.addf %17, %16 : vector<4x560xf32>
    %19 = arith.divf %17, %18 : vector<4x560xf32>
    %c0_12 = arith.constant 0 : index
    %c0_13 = arith.constant 0 : index
    %20 = vector.load %arg5[%c0_12, %c0_13] : memref<4x560xf32, #tpu.memory_space<vmem>>, vector<4x560xf32>
    tpu.vector_store %arg5[%c0_12, %c0_13], %19 {strides = array<i32>} : memref<4x560xf32, #tpu.memory_space<vmem>>, vector<4x560xf32>,
    return
  }
}

</mosaic_0001>

<bundles_post_ra>
// kernel: vae_decode.1
= control target key start
LH: loop header
LB: loop body
LE: loop exit
PB: predicated region body
PF: predicated region fallthrough
CT: control target
= control target key end

     0   :  { %vm58_vm0 = vcmask 1041408   ;;  %v1103_v3 = vmov 0   ;;  %vm54_vm1 = vcmask 162816   ;;  %s1412_s0 = inlined_call_operand.vmem [shape: f32[4,20], index: 0, kind: input, shape index: {}]   ;;  %s1413_s1 = inlined_call_operand.vmem [shape: bf16[20,256], index: 1, kind: input, shape index: {}]   ;;  %s1414_s2 = inlined_call_operand.vmem [shape: f32[1,256], index: 2, kind: input, shape index: {}]   ;;  %s1415_s3 = inlined_call_operand.vmem [shape: bf16[256,560], index: 3, kind: input, shape index: {}]   ;;  %s1416_s4 = inlined_call_operand.vmem [shape: f32[1,560], index: 4, kind: input, shape index: {}]   ;;  %s1417_s5 = inlined_call_operand.hbm [shape: f32[4,560], index: 5, kind: output, shape index: {}]  }
   0x1   :  { %v942_v0 = vld [vmem:[%s1413_s1 + $0x4] ss:$8 sps:$4 sm:$0xff]   ;;  %v944_v1 = vld [vmem:[%s1413_s1] ss:$8 sps:$4 sm:$0xff]   ;;  %v26_v2 = vld [vmem:[%s1413_s1 + $0x10] sm:$0x33]  ;;  %97 = vmatprep.mubr.bf16.mxu0 %v1103_v3 }
   0x2   :  { %v22_v4 = vld [vmem:[%s1412_s0] sm:$0xf]  ;;  %65 = vmatprep.subr.bf16.mxu0 %v942_v0  ;;  %v830_v5 = vcombine.high %v26_v2, %v26_v2  ;;  %v829_v6 = vcombine.low %v26_v2, %v26_v2  ;;  %v947_v7 = vld [vmem:[%s1415_s3 + $0x4] ss:$20 sps:$4 sm:$0xff]   ;;  %v955_v12 = vld [vmem:[%s1415_s3 + $0x28] ss:$20 sps:$4 sm:$0xff]  }
   0x3   :  { %66 = vmatpush1.bf16.msra.mxu0 %v944_v1  ;;  %v949_v8 = vld [vmem:[%s1415_s3] ss:$20 sps:$4 sm:$0xff]   ;;  %649 = vmatprep.subr.bf16.mxu1 %v947_v7  ;;  %v23_v13 = vpack.c.bf16 %v22_v4, %v22_v4  ;;  %v950_v14 = vld [vmem:[%s1415_s3 + $0x8] ss:$20 sps:$4 sm:$0xff]   ;;  %v961_v17 = vld [vmem:[%s1415_s3 + $0x50] ss:$20 sps:$4 sm:$0xff]  }
   0x4   :  { %831 = vmatprep.subr.msk.bf16.mxu0 %vm58_vm0, %v830_v5  ;;  %v60_v9 = vsel %vm58_vm0, %v829_v6, 0  ;;  %v952_v10 = vld [vmem:[%s1415_s3 + $0xc] ss:$20 sps:$4 sm:$0xff]   ;;  %650 = vmatpush1.bf16.msra.mxu1 %v949_v8  ;;  %v958_v15 = vld [vmem:[%s1415_s3 + $0x34] ss:$20 sps:$4 sm:$0xff]  }
   0x5   :  { %v953_v11 = vld [vmem:[%s1415_s3 + $0x2c] ss:$20 sps:$4 sm:$0xff]   ;;  %v959_v16 = vld [vmem:[%s1415_s3 + $0x54] ss:$20 sps:$4 sm:$0xff]   ;;  %v965_v18 = vld [vmem:[%s1415_s3 + $0x7c] ss:$20 sps:$4 sm:$0xff]  }
   0x6   :  { %651 = vmatprep.subr.bf16.mxu1 %v953_v11  ;;  %v956_v19 = vld [vmem:[%s1415_s3 + $0x30] ss:$20 sps:$4 sm:$0xff]   ;;  %v967_v21 = vld [vmem:[%s1415_s3 + $0x78] ss:$20 sps:$4 sm:$0xff]   ;;  %v973_v25 = vld [vmem:[%s1415_s3 + $0xa0] ss:$20 sps:$4 sm:$0xff]  }
   0x7   :  { %68 = vmatpush1.bf16.msra.mxu0 %v60_v9  ;;  %v964_v20 = vld [vmem:[%s1415_s3 + $0x5c] ss:$20 sps:$4 sm:$0xff]   ;;  %v971_v22 = vld [vmem:[%s1415_s3 + $0xa4] ss:$20 sps:$4 sm:$0xff]   ;;  %v977_v26 = vld [vmem:[%s1415_s3 + $0xcc] ss:$20 sps:$4 sm:$0xff]  }
   0x8   :  { %690 = vmatprep.subr.bf16.mxu0 %v952_v10  ;;  %652 = vmatpush1.bf16.msra.mxu1 %v955_v12  ;;  %v962_v23 = vld [vmem:[%s1415_s3 + $0x58] ss:$20 sps:$4 sm:$0xff]   ;;  %v968_v27 = vld [vmem:[%s1415_s3 + $0x80] ss:$20 sps:$4 sm:$0xff]   ;;  %v979_v29 = vld [vmem:[%s1415_s3 + $0xc8] ss:$20 sps:$4 sm:$0xff]  }
   0x9   :  { %653 = vmatprep.subr.bf16.mxu1 %v959_v16  ;;  %v970_v24 = vld [vmem:[%s1415_s3 + $0x84] ss:$20 sps:$4 sm:$0xff]   ;;  %v976_v28 = vld [vmem:[%s1415_s3 + $0xac] ss:$20 sps:$4 sm:$0xff]   ;;  %v983_v30 = vld [vmem:[%s1415_s3 + $0xf4] ss:$20 sps:$4 sm:$0xff]  }
   0xa   :  { %832 = vmatmul.mubr.msk.bf16.vlgmr.msra.gmra.mrb[0].mxu0 %vm54_vm1, %v23_v13  ;;  %v974_v31 = vld [vmem:[%s1415_s3 + $0xa8] ss:$20 sps:$4 sm:$0xff]   ;;  %v985_v33 = vld [vmem:[%s1415_s3 + $0xf0] ss:$20 sps:$4 sm:$0xff]   ;;  %v991_v37 = vld [vmem:[%s1415_s3 + $0x118] ss:$20 sps:$4 sm:$0xff]  }
   0xb   :  { %691 = vmatpush1.bf16.msra.mxu0 %v950_v14  ;;  %v982_v32 = vld [vmem:[%s1415_s3 + $0xd4] ss:$20 sps:$4 sm:$0xff]   ;;  %v989_v34 = vld [vmem:[%s1415_s3 + $0x11c] ss:$20 sps:$4 sm:$0xff]   ;;  %v995_v38 = vld [vmem:[%s1415_s3 + $0x144] ss:$20 sps:$4 sm:$0xff]  }
   0xc   :  { %692 = vmatprep.subr.bf16.mxu0 %v958_v15  ;;  %654 = vmatpush1.bf16.msra.mxu1 %v961_v17  ;;  %v980_v35 = vld [vmem:[%s1415_s3 + $0xd0] ss:$20 sps:$4 sm:$0xff]   ;;  %v986_v39 = vld [vmem:[%s1415_s3 + $0xf8] ss:$20 sps:$4 sm:$0xff]   ;;  %v997_v41 = vld [vmem:[%s1415_s3 + $0x140] ss:$20 sps:$4 sm:$0xff]  }
   0xd   :  { %655 = vmatprep.subr.bf16.mxu1 %v965_v18  ;;  %v988_v36 = vld [vmem:[%s1415_s3 + $0xfc] ss:$20 sps:$4 sm:$0xff]   ;;  %v994_v40 = vld [vmem:[%s1415_s3 + $0x124] ss:$20 sps:$4 sm:$0xff]   ;;  %v1001_v42 = vld [vmem:[%s1415_s3 + $0x16c] ss:$20 sps:$4 sm:$0xff]  }
   0xe   :  { %v992_v43 = vld [vmem:[%s1415_s3 + $0x120] ss:$20 sps:$4 sm:$0xff]   ;;  %v998_v45 = vld [vmem:[%s1415_s3 + $0x148] ss:$20 sps:$4 sm:$0xff]   ;;  %v1009_v49 = vld [vmem:[%s1415_s3 + $0x190] ss:$20 sps:$4 sm:$0xff]  }
   0xf   :  { %693 = vmatpush1.bf16.msra.mxu0 %v956_v19  ;;  %v1000_v44 = vld [vmem:[%s1415_s3 + $0x14c] ss:$20 sps:$4 sm:$0xff]   ;;  %v1003_v46 = vld [vmem:[%s1415_s3 + $0x168] ss:$20 sps:$4 sm:$0xff]   ;;  %v1004_v51 = vld [vmem:[%s1415_s3 + $0x170] ss:$20 sps:$4 sm:$0xff]  }
  0x10   :  { %694 = vmatprep.subr.bf16.mxu0 %v964_v20  ;;  %656 = vmatpush1.bf16.msra.mxu1 %v967_v21  ;;  %v1007_v47 = vld [vmem:[%s1415_s3 + $0x194] ss:$20 sps:$4 sm:$0xff]   ;;  %v1013_v50 = vld [vmem:[%s1415_s3 + $0x1bc] ss:$20 sps:$4 sm:$0xff]   ;;  %v1015_v53 = vld [vmem:[%s1415_s3 + $0x1b8] ss:$20 sps:$4 sm:$0xff]  }
  0x11   :  { %657 = vmatprep.subr.bf16.mxu1 %v971_v22  ;;  %v1006_v48 = vld [vmem:[%s1415_s3 + $0x174] ss:$20 sps:$4 sm:$0xff]   ;;  %v1012_v52 = vld [vmem:[%s1415_s3 + $0x19c] ss:$20 sps:$4 sm:$0xff]   ;;  %v1019_v54 = vld [vmem:[%s1415_s3 + $0x1e4] ss:$20 sps:$4 sm:$0xff]  }
  0x12   :  { %v1010_v55 = vld [vmem:[%s1415_s3 + $0x198] ss:$20 sps:$4 sm:$0xff]   ;;  %v1021_v57 = vld [vmem:[%s1415_s3 + $0x1e0] ss:$20 sps:$4 sm:$0xff]   ;;  %v1027_v61 = vld [vmem:[%s1415_s3 + $0x208] ss:$20 sps:$4 sm:$0xff]  }
  0x13   :  { %695 = vmatpush1.bf16.msra.mxu0 %v962_v23  ;;  %v1018_v56 = vld [vmem:[%s1415_s3 + $0x1c4] ss:$20 sps:$4 sm:$0xff]   ;;  %v1025_v58 = vld [vmem:[%s1415_s3 + $0x20c] ss:$20 sps:$4 sm:$0xff]  }
  0x14   :  { %696 = vmatprep.subr.bf16.mxu0 %v970_v24  ;;  %658 = vmatpush1.bf16.msra.mxu1 %v973_v25  ;;  %v1016_v59 = vld [vmem:[%s1415_s3 + $0x1c0] ss:$20 sps:$4 sm:$0xff]  }
  0x15   :  { %659 = vmatprep.subr.bf16.mxu1 %v977_v26  ;;  %v1024_v60 = vld [vmem:[%s1415_s3 + $0x1ec] ss:$20 sps:$4 sm:$0xff]  }
  0x17   :  { %697 = vmatpush1.bf16.msra.mxu0 %v968_v27 }
  0x18   :  { %698 = vmatprep.subr.bf16.mxu0 %v976_v28  ;;  %660 = vmatpush1.bf16.msra.mxu1 %v979_v29 }
  0x19   :  { %661 = vmatprep.subr.bf16.mxu1 %v983_v30 }
  0x1b   :  { %699 = vmatpush1.bf16.msra.mxu0 %v974_v31 }
  0x1c   :  { %700 = vmatprep.subr.bf16.mxu0 %v982_v32  ;;  %662 = vmatpush1.bf16.msra.mxu1 %v985_v33 }
  0x1d   :  { %663 = vmatprep.subr.bf16.mxu1 %v989_v34 }
  0x1f   :  { %701 = vmatpush1.bf16.msra.mxu0 %v980_v35 }
  0x20   :  { %702 = vmatprep.subr.bf16.mxu0 %v988_v36  ;;  %664 = vmatpush1.bf16.msra.mxu1 %v991_v37 }
  0x21   :  { %665 = vmatprep.subr.bf16.mxu1 %v995_v38 }
  0x23   :  { %703 = vmatpush1.bf16.msra.mxu0 %v986_v39 }
  0x24   :  { %704 = vmatprep.subr.bf16.mxu0 %v994_v40  ;;  %666 = vmatpush1.bf16.msra.mxu1 %v997_v41 }
  0x25   :  { %667 = vmatprep.subr.bf16.mxu1 %v1001_v42 }
  0x27   :  { %705 = vmatpush1.bf16.msra.mxu0 %v992_v43 }
  0x28   :  { %706 = vmatprep.subr.bf16.mxu0 %v1000_v44  ;;  %668 = vmatpush1.bf16.msra.mxu1 %v1003_v46 }
  0x29   :  { %669 = vmatprep.subr.bf16.mxu1 %v1007_v47 }
  0x2b   :  { %707 = vmatpush1.bf16.msra.mxu0 %v998_v45 }
  0x2c   :  { %708 = vmatprep.subr.bf16.mxu0 %v1006_v48  ;;  %670 = vmatpush1.bf16.msra.mxu1 %v1009_v49 }
  0x2d   :  { %671 = vmatprep.subr.bf16.mxu1 %v1013_v50 }
  0x2f   :  { %709 = vmatpush1.bf16.msra.mxu0 %v1004_v51 }
  0x30   :  { %710 = vmatprep.subr.bf16.mxu0 %v1012_v52  ;;  %672 = vmatpush1.bf16.msra.mxu1 %v1015_v53 }
  0x31   :  { %673 = vmatprep.subr.bf16.mxu1 %v1019_v54 }
  0x33   :  { %711 = vmatpush1.bf16.msra.mxu0 %v1010_v55 }
  0x34   :  { %712 = vmatprep.subr.bf16.mxu0 %v1018_v56  ;;  %674 = vmatpush1.bf16.msra.mxu1 %v1021_v57 }
  0x35   :  { %10 = vsyncpa [#allocation3], 0  ;;  %675 = vmatprep.subr.bf16.mxu1 %v1025_v58  ;;  %v1022_v62 = vld [vmem:[%s1415_s3 + $0x1e8] ss:$20 sps:$4 sm:$0xff]   ;;  %v1028_v0 = vld [vmem:[%s1415_s3 + $0x210] ss:$20 sps:$4 sm:$0xff]   ;;  %v29_v10 = vlaneseq }
  0x36   :  { %v1030_v63 = vld [vmem:[%s1415_s3 + $0x214] ss:$20 sps:$4 sm:$0xff]   ;;  %v1033_v2 = vld [vmem:[%s1415_s3 + $0x230] ss:$20 sps:$4 sm:$0xff]   ;;  %v1034_v4 = vld [vmem:[%s1415_s3 + $0x238] ss:$20 sps:$4 sm:$0xff]  }
  0x37   :  { %713 = vmatpush1.bf16.msra.mxu0 %v1016_v59  ;;  %v1031_v1 = vld [vmem:[%s1415_s3 + $0x234] ss:$20 sps:$4 sm:$0xff]   ;;  %v1036_v3 = vld [vmem:[%s1415_s3 + $0x23c] ss:$20 sps:$4 sm:$0xff]   ;;  %v1039_v6 = vld [vmem:[%s1415_s3 + $0x258] ss:$20 sps:$4 sm:$0xff]  }
  0x38   :  { %714 = vmatprep.subr.bf16.mxu0 %v1024_v60  ;;  %676 = vmatpush1.bf16.msra.mxu1 %v1027_v61  ;;  %v1037_v5 = vld [vmem:[%s1415_s3 + $0x25c] ss:$20 sps:$4 sm:$0xff]   ;;  %v1042_v7 = vld [vmem:[%s1415_s3 + $0x264] ss:$20 sps:$4 sm:$0xff]   ;;  %v1040_v8 = vld [vmem:[%s1415_s3 + $0x260] ss:$20 sps:$4 sm:$0xff]  }
  0x39   :  { %677 = vmatprep.subr.bf16.mxu1 %v1031_v1  ;;  %v1043_v9 = vld [vmem:[%s1415_s3 + $0x150] ss:$20 sps:$4 sm:$0xff]   ;;  %v1342_v11 = vshrl.u32 %v29_v10, 7  ;;  %v27_v13 = vld [vmem:[%s1414_s2] sm:$0x3]  ;;  %vm811_vm2 = vcmask 388096  }
  0x3a   :  { %v1044_v26 = vld [vmem:[%s1415_s3 + $0x10] ss:$20 sps:$4 sm:$0xff]   ;;  %v1045_v28 = vld [vmem:[%s1415_s3 + $0x178] ss:$20 sps:$4 sm:$0xff]   ;;  %v1047_v30 = vld [vmem:[%s1415_s3 + $0x1a0] ss:$20 sps:$4 sm:$0xff]  }
  0x3b   :  { %715 = vmatpush1.bf16.msra.mxu0 %v1022_v62  ;;  %v31_v12 = vsub.s32 0, %v1342_v11  ;;  %v35_v14 = vsub.s32 1, %v1342_v11  ;;  %v1046_v29 = vld [vmem:[%s1415_s3 + $0x38] ss:$20 sps:$4 sm:$0xff]   ;;  %v1048_v31 = vld [vmem:[%s1415_s3 + $0x60] ss:$20 sps:$4 sm:$0xff]  }
  0x3c   :  { %716 = vmatprep.subr.bf16.mxu0 %v1030_v63  ;;  %678 = vmatpush1.bf16.msra.mxu1 %v1033_v2  ;;  %v1049_v32 = vld [vmem:[%s1415_s3 + $0x1c8] ss:$20 sps:$4 sm:$0xff]   ;;  %v1051_v34 = vld [vmem:[%s1415_s3 + $0x1f0] ss:$20 sps:$4 sm:$0xff]   ;;  %v1053_v36 = vld [vmem:[%s1415_s3 + $0x218] ss:$20 sps:$4 sm:$0xff]  }
  0x3d   :  { %679 = vmatprep.subr.bf16.mxu1 %v1037_v5  ;;  %v32_v15 = vrot.slane %v27_v13, %v31_v12  ;;  %v36_v16 = vrot.slane %v27_v13, %v35_v14  ;;  %v1050_v33 = vld [vmem:[%s1415_s3 + $0x88] ss:$20 sps:$4 sm:$0xff]   ;;  %v1052_v35 = vld [vmem:[%s1415_s3 + $0xb0] ss:$20 sps:$4 sm:$0xff]   ;;  %v1054_v37 = vld [vmem:[%s1415_s3 + $0xd8] ss:$20 sps:$4 sm:$0xff]  }
  0x3e   :  { %v1055_v38 = vld [vmem:[%s1415_s3 + $0x240] ss:$20 sps:$4 sm:$0xff]   ;;  %v1057_v40 = vld [vmem:[%s1415_s3 + $0x268] ss:$20 sps:$4 sm:$0xff]   ;;  %v218_v42 = vsub.s32 2, %v1342_v11  ;;  %v222_v44 = vsub.s32 3, %v1342_v11 }
  0x3f   :  { %717 = vmatpush1.bf16.msra.mxu0 %v1028_v0  ;;  %v1056_v39 = vld [vmem:[%s1415_s3 + $0x100] ss:$20 sps:$4 sm:$0xff]   ;;  %v1058_v41 = vld [vmem:[%s1415_s3 + $0x128] ss:$20 sps:$4 sm:$0xff]   ;;  %v226_v10 = vsub.s32 4, %v1342_v11  ;;  %s1104_s3 = smov [#allocation2]  }
  0x40   :  { %718 = vmatprep.subr.bf16.mxu0 %v1036_v3  ;;  %680 = vmatpush1.bf16.msra.mxu1 %v1039_v6  ;;  %v206_v43 = vld [vmem:[%s1416_s4] sm:$0x1f]  ;;  %s819_s4 = sshll.u32 %s1104_s3, 4  ;;  %s820_s4 = int_to_ptr.vmem [resolvable:$true] %s819_s4 }
  0x41   :  { %918 = vmatprep.subr.bf16.mxu1 %v1043_v9  ;;  %v211_v45 = vrot.slane %v206_v43, %v31_v12  ;;  %v219_v46 = vrot.slane %v206_v43, %v218_v42  ;;  %v215_v47 = vrot.slane %v206_v43, %v35_v14  ;;  %v223_v48 = vrot.slane %v206_v43, %v222_v44  ;;  %s1079_s26 = scalar_lea.vmem %s820_s4, 320  ;;  %p1084_p1 = scmp.lt.s32.totalorder %s820_s4, %s820_s4 }
  0x42   :  { %p1080_p0 = scmp.ne.s32.totalorder %s820_s4, %s1079_s26  ;;  %p1085_p2 = scmp.lt.s32.totalorder %s1079_s26, %s1079_s26 }
  0x43   :  { %719 = vmatpush1.bf16.msra.mxu0 %v1034_v4 }
  0x44   :  { %720 = vmatprep.subr.bf16.mxu0 %v1042_v7  ;;  %p1086_p3 = por %p1085_p2, %p1084_p1 }
  0x46   :  { %p1087_p4 = pnand %p1086_p3, %p1080_p0 }
  0x47   :  { %721 = vmatpush1.bf16.msra.mxu0 %v1040_v8 }
  0xdd   :  { %v99_v17 = vpop.f32.mrb[0].mxu0 }
  0xde   :  { %v100_v18 = vadd.f32 %v99_v17, %v32_v15  ;;  %v101_v19 = vpop.f32.mrb[1].mxu0  ;;  %v227_v17 = vrot.slane %v206_v43, %v226_v10 }
  0xdf   :  { %v102_v20 = vadd.f32 %v101_v19, %v36_v16  ;;  %v103_v21 = vpop.f32.mrb[2].mxu0 }
  0xe0   :  { %v106_v22 = vmax.f32 %v100_v18, 0.0  ;;  %v104_v23 = vpop.f32.mrb[3].mxu0 }
  0xe1   :  { %v107_v24 = vmax.f32 %v102_v20, 0.0 }
  0xe2   :  { %v108_v27 = vpack.c.bf16 %v106_v22, %v106_v22 }
  0xe3   :  { %v109_v25 = vpack.c.bf16 %v107_v24, %v107_v24 }
  0xe5   :  { %681 = vmatprep.mubr.bf16.mxu1 %v109_v25  ;;  %722 = vmatprep.mubr.bf16.mxu0 %v109_v25 }
  0xe6   :  { %682 = vmatmul.mubr.bf16.vlgmr.msra.gmra.mrb[0].mxu1 %v108_v27  ;;  %723 = vmatmul.mubr.bf16.vlgmr.msra.gmra.mrb[4].mxu0 %v108_v27 }
  0xe7   :  { %919 = vmatpush3.bf16.msra.mxu1 %v1044_v26  ;;  %763 = vmatprep.mubr.bf16.mxu1 %v109_v25 }
  0xe8   :  { %920 = vmatprep.subr.bf16.mxu1 %v1045_v28 }
  0xeb   :  { %921 = vmatpush3.bf16.msra.mxu1 %v1046_v29 }
  0xec   :  { %922 = vmatprep.subr.bf16.mxu1 %v1047_v30 }
  0xef   :  { %923 = vmatpush3.bf16.msra.mxu1 %v1048_v31 }
  0xf0   :  { %924 = vmatprep.subr.bf16.mxu1 %v1049_v32 }
  0xf3   :  { %925 = vmatpush3.bf16.msra.mxu1 %v1050_v33 }
  0xf4   :  { %926 = vmatprep.subr.bf16.mxu1 %v1051_v34 }
  0xf7   :  { %927 = vmatpush3.bf16.msra.mxu1 %v1052_v35 }
  0xf8   :  { %928 = vmatprep.subr.bf16.mxu1 %v1053_v36 }
  0xfb   :  { %929 = vmatpush3.bf16.msra.mxu1 %v1054_v37 }
  0xfc   :  { %930 = vmatprep.subr.bf16.mxu1 %v1055_v38 }
  0xff   :  { %931 = vmatpush3.bf16.msra.mxu1 %v1056_v39 }
 0x100   :  { %932 = vmatprep.subr.bf16.mxu1 %v1057_v40 }
 0x103   :  { %933 = vmatpush3.bf16.msra.mxu1 %v1058_v41 }
 0x106   :  { %764 = vmatmul.mubr.bf16.vlgmr.msra.gmra.mrb[4].mxu1 %v108_v27 }
 0x1b9   :  { %v683_v49 = vpop.f32.mrb[0].mxu1  ;;  %v724_v50 = vpop.f32.mrb[4].mxu0 }
 0x1ba   :  { %v684_v51 = vadd.f32 %v683_v49, %v211_v45  ;;  %v725_v52 = vadd.f32 %v724_v50, %v219_v46  ;;  %v685_v53 = vpop.f32.mrb[1].mxu1  ;;  %v726_v54 = vpop.f32.mrb[5].mxu0 }
 0x1bb   :  { %v686_v55 = vadd.f32 %v685_v53, %v215_v47  ;;  %v727_v56 = vadd.f32 %v726_v54, %v223_v48  ;;  %v687_v57 = vpop.f32.mrb[2].mxu1  ;;  %v728_v58 = vpop.f32.mrb[6].mxu0 }
 0x1bc   :  { %v913_v59 = vmul.f32 -1.442695, %v684_v51  ;;  %v915_v60 = vmul.f32 -1.442695, %v725_v52  ;;  %v688_v61 = vpop.f32.mrb[3].mxu1  ;;  %v729_v62 = vpop.f32.mrb[7].mxu0 }
 0x1bd   :  { %v914_v63 = vmul.f32 -1.442695, %v686_v55  ;;  %v916_v0 = vmul.f32 -1.442695, %v727_v56 }
 0x1be   :  { %1059 = vpow2.f32 %v913_v59 }
 0x1bf   :  { %1061 = vpow2.f32 %v915_v60 }
 0x1c0   :  { %1063 = vpow2.f32 %v914_v63 }
 0x1c1   :  { %1065 = vpow2.f32 %v916_v0 }
 0x1c8   :  { %v1060_v1 = vpop.eup %1059 }
 0x1c9   :  { %v1062_v2 = vpop.eup %1061  ;;  %v786_v3 = vadd.f32 1.0, %v1060_v1 }
 0x1ca   :  { %v1064_v4 = vpop.eup %1063  ;;  %v788_v5 = vadd.f32 1.0, %v1062_v2 }
 0x1cb   :  { %v1066_v6 = vpop.eup %1065  ;;  %1067 = vrcp.f32 %v786_v3  ;;  %v787_v7 = vadd.f32 1.0, %v1064_v4 }
 0x1cc   :  { %1069 = vrcp.f32 %v788_v5  ;;  %v789_v8 = vadd.f32 1.0, %v1066_v6 }
 0x1cd   :  { %1071 = vrcp.f32 %v787_v7 }
 0x1ce   :  { %1073 = vrcp.f32 %v789_v8 }
 0x1d5   :  { %v1068_v9 = vpop.eup %1067 }
 0x1d6   :  { %v1070_v12 = vpop.eup %1069 }
 0x1d7   :  { %v1072_v13 = vpop.eup %1071 }
 0x1d8   :  { %v1074_v14 = vpop.eup %1073  ;;  %v805_v15 = vcombine.low %v1068_v9, %v1072_v13 }
 0x1d9   :  { %v934_v16 = vpop.f32.mrb[4].mxu1  ;;  %v806_v18 = vcombine.low %v1070_v12, %v1074_v14 }
 0x1da   :  { %v935_v19 = vpop.f32.mrb[5].mxu1  ;;  %809 = vst [vmem:[#allocation2] sm:$0xff] %v805_v15 }
 0x1db   :  { %v936_v20 = vadd.f32 %v935_v19, %v934_v16  ;;  %v937_v21 = vpop.f32.mrb[6].mxu1  ;;  %810 = vst [vmem:[#allocation2 + $0x8] sm:$0xff] %v806_v18 }
 0x1dc   :  { %v938_v22 = vpop.f32.mrb[7].mxu1 }
 0x1dd   :  { %v766_v23 = vadd.f32 %v936_v20, %v227_v17 }
 0x1df   :  { %v917_v24 = vmul.f32 -1.442695, %v766_v23 }
 0x1e1   :  { %1075 = vpow2.f32 %v917_v24 }
 0x1eb   :  { %v1076_v25 = vpop.eup %1075 }
 0x1ec   :  { %v790_v26 = vadd.f32 1.0, %v1076_v25 }
 0x1ee   :  { %1077 = vrcp.f32 %v790_v26 }
 0x1f8   :  { %v1078_v11 = vpop.eup %1077 }
 0x1f9   :  { %812 = vst.msk [vmem:[#allocation2 + $0x10] sm:$0xf] %vm811_vm2, %v1078_v11 }
 0x1fa   :  { %1090 = shalt.err (!%p1087_p4)
}
 0x1fb   :  { %s1091_s29 = scalar_lea.hbm %s1417_s5, 320 }
 0x1fc   :  { %p1092_p5 = scmp.ne.s32.totalorder %s1417_s5, %s1091_s29  ;;  %p1095_p6 = scmp.lt.u32.totalorder %s1091_s29, %s1417_s5 }
 0x1fe   :  { %p1097_p7 = pnand %p1095_p6, %p1092_p5 }
 0x200   :  { %1100 = shalt.err (!%p1097_p7)
}
 0x201   :  { %822 = dma.vmem_to_hbm [thread:$0]  %s820_s4, 320, %s1417_s5, [#allocation3]  }
 0x202   :  { %1101 = dma.done.wait [#allocation3], 320  }
 0x203   :  { %1102 = vsyncadd [#allocation3], 4294966976 }
 0x204   :  { %826 = vsyncpa [#allocation3], 1 }

</bundles_post_ra>
